<compile_context>
chip_gen: v7x
topology: tpu7x:2x2x1
jax: 0.10.0
libtpu: 0.0.40
codegen_flags: <defaults>
</compile_context>

<pallas_src>
import math

import numpy as np
import jax
import jax.numpy as jnp
from jax.experimental import pallas as pl
from jax.experimental.pallas import tpu as pltpu


# ----------------------------------------------------------------------------
# Deterministic "parameter" setup: replicates gaussian() / create_window().
# ----------------------------------------------------------------------------
def gaussian_taps(window_size: int, sigma: float) -> np.ndarray:
    g = np.array(
        [math.exp(-((x - window_size // 2) ** 2) / float(2 * sigma ** 2))
         for x in range(window_size)],
        dtype=np.float64,
    )
    return (g / g.sum()).astype(np.float32)


def _vmem_limit_bytes() -> int:
    """Generation-aware scoped-VMEM request (leave headroom for the pipeline)."""
    cap = 128 * 1024 * 1024
    try:
        info = pltpu.get_tpu_info()
        cap = int(getattr(info, "vmem_capacity_bytes", cap))
    except Exception:
        pass
    # ~96 MiB on 128 MiB chips (v5e/v6e), ~48 MiB on 64 MiB chips (v7x).
    return max(32 * 1024 * 1024, min(cap - 16 * 1024 * 1024, (cap * 3) // 4))


# ----------------------------------------------------------------------------
# Pallas kernel: Bt packed batch elements per grid step, per-lane partial sums.
# ----------------------------------------------------------------------------
def make_ssim_kernel(Bt, C, H, Wp, Ho, Wo_pad):
    def kernel(c_ref, ct_ref, cc_ref, x1_ref, x2_ref, out_ref):
        # c_ref  : SMEM (2,)            -> [C1, C2]
        # ct_ref : VMEM (Wp, Wo_pad)    -> banded (block-diag) row-conv matrix
        # cc_ref : VMEM (Ho, H)         -> banded column-conv matrix
        # x1_ref, x2_ref : VMEM (Bt, C, H, Wp) blocks
        # out_ref: VMEM (1, 1, Wo_pad)  -> this step's per-lane partial sums
        x1 = x1_ref[...]
        x2 = x2_ref[...]
        c1 = c_ref[0]
        c2 = c_ref[1]
        ct = ct_ref[...]
        cc = cc_ref[...]

        def sep_conv(m):                     # m: (Bt, H, Wp) channel-summed map
            # Row pass on the MXU: valid 1D conv over W as one 2D matmul
            # against the (zero-padded, block-diagonal) Toeplitz matrix.
            y = jnp.dot(m.reshape(Bt * H, Wp), ct,
                        preferred_element_type=jnp.float32)   # (Bt*H, Wo_pad)
            y = y.reshape(Bt, H, Wo_pad)
            # Column pass on the MXU: Cc (Ho, H) @ y[b] (H, Wo_pad) per element
            # (keeps the 11-tap work off the VALU; lanes stay 128-dense).
            cols = [jnp.dot(cc, y[b], preferred_element_type=jnp.float32)
                    for b in range(Bt)]
            return jnp.stack(cols, axis=0)                    # (Bt, Ho, Wo_pad)

        # Channel-sum trick (all 3 per-channel windows identical, out_ch == 1).
        mu1 = sep_conv(jnp.sum(x1, axis=1))
        mu2 = sep_conv(jnp.sum(x2, axis=1))
        e11 = sep_conv(jnp.sum(x1 * x1, axis=1))
        e22 = sep_conv(jnp.sum(x2 * x2, axis=1))
        e12 = sep_conv(jnp.sum(x1 * x2, axis=1))

        mu1_sq = mu1 * mu1
        mu2_sq = mu2 * mu2
        mu1_mu2 = mu1 * mu2
        sigma1_sq = e11 - mu1_sq
        sigma2_sq = e22 - mu2_sq
        sigma12 = e12 - mu1_mu2

        # Fused single (exact) division: 1 - l*cs.  Zero-padded lanes / batch
        # elements give num == den == C1*C2 > 0, hence exactly 0 contribution.
        num = (2.0 * mu1_mu2 + c1) * (2.0 * sigma12 + c2)
        den = (mu1_sq + mu2_sq + c1) * (sigma1_sq + sigma2_sq + c2)
        ssim_map = 1.0 - num / den                            # (Bt, Ho, Wo_pad)

        # Lane-dense partial reduction: batch + sublane sums only; the
        # cross-lane sum happens outside the kernel.
        part = jnp.sum(jnp.sum(ssim_map, axis=0), axis=0)     # (Wo_pad,)
        out_ref[...] = part.reshape(1, 1, Wo_pad)

    return kernel


# ----------------------------------------------------------------------------
# Wrapper (== SSIM.forward with weight_map=None, size_average=True).
# ----------------------------------------------------------------------------
def ssim_pallas(img1, img2, window_size=11, sigma=2.0, val_range=None):
    N, C, H, W = img1.shape
    assert C == 3, "stored window is (1, 3, K, K); channel-sum trick needs C == 3"
    K = int(window_size)
    assert H >= K and W >= K, "valid convolution requires H, W >= window_size"
    Ho, Wo = H - K + 1, W - K + 1

    img1 = img1.astype(jnp.float32)
    img2 = img2.astype(jnp.float32)

    # Dynamic-range constants on the *original* img1 (as in the reference).
    if val_range is None:
        max_val = jnp.where(jnp.max(img1) > 128, 255.0, 1.0)
        min_val = jnp.where(jnp.min(img1) < -0.5, -1.0, 0.0)
        L = max_val - min_val
    else:
        L = jnp.float32(val_range)
    cvals = jnp.stack([(0.01 * L) ** 2, (0.03 * L) ** 2]).astype(jnp.float32)

    g = gaussian_taps(K, sigma)

    # Lane packing: pack P batch elements side-by-side along W when Wo < 128
    # so the post-conv work runs on dense 128-lane vregs.
    P = 1
    if Wo < 128:
        P = max(1, min(128 // Wo, N))
    Wp = P * W
    Wo_pad = ((P * Wo + 127) // 128) * 128
    Np = -(-N // P)                       # packed batch count

    # Generation-aware VMEM budgets.
    vmem_limit = _vmem_limit_bytes()
    budget = (vmem_limit * 2) // 5        # Python-side Bt sizing budget (~40%)
    fixed = 4 * 2 * (Wp * Wo_pad + Ho * H + Wo_pad)        # ct, cc, out (x2 buf)
    per_elem = (4 * 2 * 2 * C * H * Wp                     # 2 imgs, double-buffered
                + 4 * (5 * (H * Wp + H * Wo_pad + Ho * Wo_pad) + 8 * Ho * Wo_pad))
    Bt = max(1, min(Np, max(0, budget - fixed) // per_elem, 8))
    if Np >= 2:
        Bt = min(Bt, (Np + 1) // 2)       # keep G >= 2 for v7x's two TensorCores
    G = -(-Np // Bt)

    # TODO(synk): no H/W spatial tiling — reject shapes that cannot fit VMEM.
    if fixed + Bt * per_elem > vmem_limit:
        raise ValueError(
            "SSIM Pallas kernel: per-step working set exceeds the VMEM limit; "
            "spatial (H/W) tiling is not implemented for images this large.")

    # Zero-pad batch to G*Bt*P (zero images contribute exactly 0 to the sum).
    N_total = G * Bt * P
    if N_total != N:
        pad = ((0, N_total - N), (0, 0), (0, 0), (0, 0))
        img1 = jnp.pad(img1, pad)
        img2 = jnp.pad(img2, pad)
    if P > 1:
        def pack(x):
            x = x.reshape(G * Bt, P, C, H, W)
            x = jnp.transpose(x, (0, 2, 3, 1, 4))
            return x.reshape(G * Bt, C, H, Wp)
        img1 = pack(img1)
        img2 = pack(img2)
    else:
        img1 = img1.reshape(G * Bt, C, H, Wp)
        img2 = img2.reshape(G * Bt, C, H, Wp)

    # Banded (block-diagonal Toeplitz) row-pass matrix: strip p maps input
    # columns [p*W, p*W+W) to output columns [p*Wo, p*Wo+Wo); rest are zero.
    ct = np.zeros((Wp, Wo_pad), dtype=np.float32)
    for p in range(P):
        for b in range(Wo):
            ct[p * W + b: p * W + b + K, p * Wo + b] = g
    ct = jnp.asarray(ct)

    # Banded column-pass matrix (Ho, H).
    cc = np.zeros((Ho, H), dtype=np.float32)
    for o in range(Ho):
        cc[o, o:o + K] = g
    cc = jnp.asarray(cc)

    kernel = make_ssim_kernel(Bt, C, H, Wp, Ho, Wo_pad)

    partials = pl.pallas_call(
        kernel,
        out_shape=jax.ShapeDtypeStruct((G, 1, Wo_pad), jnp.float32),
        grid=(G,),
        in_specs=[
            pl.BlockSpec(memory_space=pltpu.MemorySpace.SMEM),      # [C1, C2]
            pl.BlockSpec((Wp, Wo_pad), lambda n: (0, 0)),           # row-pass Ct
            pl.BlockSpec((Ho, H), lambda n: (0, 0)),                # col-pass Cc
            pl.BlockSpec((Bt, C, H, Wp), lambda n: (n, 0, 0, 0)),   # img1 tile
            pl.BlockSpec((Bt, C, H, Wp), lambda n: (n, 0, 0, 0)),   # img2 tile
        ],
        out_specs=pl.BlockSpec((1, 1, Wo_pad), lambda n: (n, 0, 0)),
        compiler_params=pltpu.CompilerParams(
            dimension_semantics=("parallel",),       # no cross-step state
            vmem_limit_bytes=int(vmem_limit),
        ),
    )(cvals, ct, cc, img1, img2)

    # size_average=True mean over the true (unpadded) ssim map.
    return jnp.sum(partials) / jnp.float32(N * Ho * Wo)


# ----------------------------------------------------------------------------
# Pure-JAX reference (mirrors the PyTorch ssim() exactly, for verification).
# ----------------------------------------------------------------------------
def ssim_ref(img1, img2, window2d):
    N, C, H, W = img1.shape
    K = window2d.shape[0]
    Ho, Wo = H - K + 1, W - K + 1
    img1 = img1.astype(jnp.float32)
    img2 = img2.astype(jnp.float32)

    max_val = jnp.where(jnp.max(img1) > 128, 255.0, 1.0)
    min_val = jnp.where(jnp.min(img1) < -0.5, -1.0, 0.0)
    L = max_val - min_val
    c1 = (0.01 * L) ** 2
    c2 = (0.03 * L) ** 2

    def conv(x):  # x: (N, H, W), valid conv with the 2D window
        out = jnp.zeros((N, Ho, Wo), jnp.float32)
        for i in range(K):
            for j in range(K):
                out = out + window2d[i, j] * x[:, i:i + Ho, j:j + Wo]
        return out

    mu1 = conv(img1.sum(1))
    mu2 = conv(img2.sum(1))
    e11 = conv((img1 * img1).sum(1))
    e22 = conv((img2 * img2).sum(1))
    e12 = conv((img1 * img2).sum(1))

    mu1_sq, mu2_sq, mu1_mu2 = mu1 * mu1, mu2 * mu2, mu1 * mu2
    sigma1_sq = e11 - mu1_sq
    sigma2_sq = e22 - mu2_sq
    sigma12 = e12 - mu1_mu2

    l_map = (2.0 * mu1_mu2 + c1) / (mu1_sq + mu2_sq + c1)
    cs_map = (2.0 * sigma12 + c2) / (sigma1_sq + sigma2_sq + c2)
    return jnp.mean(1.0 - l_map * cs_map)


if __name__ == "__main__":
    # Module config: window_size=11, sigma=2, size_average=True, val_range=None.
    WINDOW_SIZE = 11
    SIGMA = 2.0
    N, C, H, W = 2, 3, 16, 16   # C must be 3: the stored window is (1, 3, 11, 11)

    key = jax.random.PRNGKey(0)
    k1, k2 = jax.random.split(key)
    img1 = jax.random.uniform(k1, (N, C, H, W), dtype=jnp.float32)
    img2 = jnp.clip(
        img1 + 0.05 * jax.random.normal(k2, (N, C, H, W), dtype=jnp.float32), 0.0, 1.0
    )

    out = ssim_pallas(img1, img2, window_size=WINDOW_SIZE, sigma=SIGMA)
    out = jax.block_until_ready(out)

    g_np = gaussian_taps(WINDOW_SIZE, SIGMA)
    window2d = jnp.asarray(np.outer(g_np, g_np).astype(np.float32))
    ref = jax.block_until_ready(ssim_ref(img1, img2, window2d))

    assert abs(float(out) - float(ref)) < 1e-4 + 1e-3 * abs(float(ref)), (
        float(out), float(ref))

    print("KERNEL_OK")
</pallas_src>

<mosaic_0001>
module attributes {stable_mosaic.version = 11 : i64} {
  func.func @kernel(%arg0: i32, %arg1: memref<2xf32, #tpu.memory_space<smem>>, %arg2: memref<32x128xf32, #tpu.memory_space<vmem>>, %arg3: memref<6x16xf32, #tpu.memory_space<vmem>>, %arg4: memref<1x3x16x32xf32, #tpu.memory_space<vmem>>, %arg5: memref<1x3x16x32xf32, #tpu.memory_space<vmem>>, %arg6: memref<1x1x128xf32, #tpu.memory_space<vmem>>) attributes {dimension_semantics = [#tpu.dimension_semantics<parallel>], iteration_bounds = array<i64: 1>, scalar_prefetch = 0 : i64, scratch_operands = 0 : i64, tpu.core_type = #tpu.core_type<tc>, window_params = [{transform_indices = @transform_0, window_bounds = array<i64: 2>}, {pipeline_mode = #tpu.pipeline_mode<synchronous>, transform_indices = @transform_1, window_bounds = array<i64: 32, 128>}, {pipeline_mode = #tpu.pipeline_mode<synchronous>, transform_indices = @transform_2, window_bounds = array<i64: 6, 16>}, {transform_indices = @transform_3, window_bounds = array<i64: 1, 3, 16, 32>}, {transform_indices = @transform_4, window_bounds = array<i64: 1, 3, 16, 32>}, {transform_indices = @transform_5, window_bounds = array<i64: 1, 1, 128>}]} {
    %c0 = arith.constant 0 : index
    %c0_0 = arith.constant 0 : index
    %c0_1 = arith.constant 0 : index
    %c0_2 = arith.constant 0 : index
    %0 = vector.load %arg4[%c0, %c0_0, %c0_1, %c0_2] : memref<1x3x16x32xf32, #tpu.memory_space<vmem>>, vector<1x3x16x32xf32>
    %c0_3 = arith.constant 0 : index
    %c0_4 = arith.constant 0 : index
    %c0_5 = arith.constant 0 : index
    %c0_6 = arith.constant 0 : index
    %1 = vector.load %arg5[%c0_3, %c0_4, %c0_5, %c0_6] : memref<1x3x16x32xf32, #tpu.memory_space<vmem>>, vector<1x3x16x32xf32>
    %c0_7 = arith.constant 0 : index
    %2 = memref.load %arg1[%c0_7] : memref<2xf32, #tpu.memory_space<smem>>
    %c1 = arith.constant 1 : index
    %3 = memref.load %arg1[%c1] : memref<2xf32, #tpu.memory_space<smem>>
    %c0_8 = arith.constant 0 : index
    %c0_9 = arith.constant 0 : index
    %4 = vector.load %arg2[%c0_8, %c0_9] : memref<32x128xf32, #tpu.memory_space<vmem>>, vector<32x128xf32>
    %c0_10 = arith.constant 0 : index
    %c0_11 = arith.constant 0 : index
    %5 = vector.load %arg3[%c0_10, %c0_11] : memref<6x16xf32, #tpu.memory_space<vmem>>, vector<6x16xf32>
    %cst = arith.constant dense<0.000000e+00> : vector<1x16x32xf32>
    %6 = vector.multi_reduction <add>, %0, %cst [1] : vector<1x3x16x32xf32> to vector<1x16x32xf32>
    %7 = vector.shape_cast %6 : vector<1x16x32xf32> to vector<16x32xf32>
    %cst_12 = arith.constant dense<0.000000e+00> : vector<16x128xf32>
    %8 = tpu.matmul %7, %4, %cst_12 {dimension_numbers = #tpu.dot_dimension_numbers<[1], [0], [0], [1], [0, 0, 1, 1], [], []>} : vector<16x32xf32>, vector<32x128xf32>, vector<16x128xf32> -> vector<16x128xf32>
    %9 = vector.shape_cast %8 : vector<16x128xf32> to vector<1x16x128xf32>
    %10 = vector.shape_cast %9 : vector<1x16x128xf32> to vector<16x128xf32>
    %cst_13 = arith.constant dense<0.000000e+00> : vector<6x128xf32>
    %11 = tpu.matmul %5, %10, %cst_13 {dimension_numbers = #tpu.dot_dimension_numbers<[1], [0], [0], [1], [0, 0, 1, 1], [], []>} : vector<6x16xf32>, vector<16x128xf32>, vector<6x128xf32> -> vector<6x128xf32>
    %12 = vector.shape_cast %11 : vector<6x128xf32> to vector<1x6x128xf32>
    %cst_14 = arith.constant dense<0.000000e+00> : vector<1x16x32xf32>
    %13 = vector.multi_reduction <add>, %1, %cst_14 [1] : vector<1x3x16x32xf32> to vector<1x16x32xf32>
    %14 = vector.shape_cast %13 : vector<1x16x32xf32> to vector<16x32xf32>
    %cst_15 = arith.constant dense<0.000000e+00> : vector<16x128xf32>
    %15 = tpu.matmul %14, %4, %cst_15 {dimension_numbers = #tpu.dot_dimension_numbers<[1], [0], [0], [1], [0, 0, 1, 1], [], []>} : vector<16x32xf32>, vector<32x128xf32>, vector<16x128xf32> -> vector<16x128xf32>
    %16 = vector.shape_cast %15 : vector<16x128xf32> to vector<1x16x128xf32>
    %17 = vector.shape_cast %16 : vector<1x16x128xf32> to vector<16x128xf32>
    %cst_16 = arith.constant dense<0.000000e+00> : vector<6x128xf32>
    %18 = tpu.matmul %5, %17, %cst_16 {dimension_numbers = #tpu.dot_dimension_numbers<[1], [0], [0], [1], [0, 0, 1, 1], [], []>} : vector<6x16xf32>, vector<16x128xf32>, vector<6x128xf32> -> vector<6x128xf32>
    %19 = vector.shape_cast %18 : vector<6x128xf32> to vector<1x6x128xf32>
    %20 = arith.mulf %0, %0 : vector<1x3x16x32xf32>
    %cst_17 = arith.constant dense<0.000000e+00> : vector<1x16x32xf32>
    %21 = vector.multi_reduction <add>, %20, %cst_17 [1] : vector<1x3x16x32xf32> to vector<1x16x32xf32>
    %22 = vector.shape_cast %21 : vector<1x16x32xf32> to vector<16x32xf32>
    %cst_18 = arith.constant dense<0.000000e+00> : vector<16x128xf32>
    %23 = tpu.matmul %22, %4, %cst_18 {dimension_numbers = #tpu.dot_dimension_numbers<[1], [0], [0], [1], [0, 0, 1, 1], [], []>} : vector<16x32xf32>, vector<32x128xf32>, vector<16x128xf32> -> vector<16x128xf32>
    %24 = vector.shape_cast %23 : vector<16x128xf32> to vector<1x16x128xf32>
    %25 = vector.shape_cast %24 : vector<1x16x128xf32> to vector<16x128xf32>
    %cst_19 = arith.constant dense<0.000000e+00> : vector<6x128xf32>
    %26 = tpu.matmul %5, %25, %cst_19 {dimension_numbers = #tpu.dot_dimension_numbers<[1], [0], [0], [1], [0, 0, 1, 1], [], []>} : vector<6x16xf32>, vector<16x128xf32>, vector<6x128xf32> -> vector<6x128xf32>
    %27 = vector.shape_cast %26 : vector<6x128xf32> to vector<1x6x128xf32>
    %28 = arith.mulf %1, %1 : vector<1x3x16x32xf32>
    %cst_20 = arith.constant dense<0.000000e+00> : vector<1x16x32xf32>
    %29 = vector.multi_reduction <add>, %28, %cst_20 [1] : vector<1x3x16x32xf32> to vector<1x16x32xf32>
    %30 = vector.shape_cast %29 : vector<1x16x32xf32> to vector<16x32xf32>
    %cst_21 = arith.constant dense<0.000000e+00> : vector<16x128xf32>
    %31 = tpu.matmul %30, %4, %cst_21 {dimension_numbers = #tpu.dot_dimension_numbers<[1], [0], [0], [1], [0, 0, 1, 1], [], []>} : vector<16x32xf32>, vector<32x128xf32>, vector<16x128xf32> -> vector<16x128xf32>
    %32 = vector.shape_cast %31 : vector<16x128xf32> to vector<1x16x128xf32>
    %33 = vector.shape_cast %32 : vector<1x16x128xf32> to vector<16x128xf32>
    %cst_22 = arith.constant dense<0.000000e+00> : vector<6x128xf32>
    %34 = tpu.matmul %5, %33, %cst_22 {dimension_numbers = #tpu.dot_dimension_numbers<[1], [0], [0], [1], [0, 0, 1, 1], [], []>} : vector<6x16xf32>, vector<16x128xf32>, vector<6x128xf32> -> vector<6x128xf32>
    %35 = vector.shape_cast %34 : vector<6x128xf32> to vector<1x6x128xf32>
    %36 = arith.mulf %0, %1 : vector<1x3x16x32xf32>
    %cst_23 = arith.constant dense<0.000000e+00> : vector<1x16x32xf32>
    %37 = vector.multi_reduction <add>, %36, %cst_23 [1] : vector<1x3x16x32xf32> to vector<1x16x32xf32>
    %38 = vector.shape_cast %37 : vector<1x16x32xf32> to vector<16x32xf32>
    %cst_24 = arith.constant dense<0.000000e+00> : vector<16x128xf32>
    %39 = tpu.matmul %38, %4, %cst_24 {dimension_numbers = #tpu.dot_dimension_numbers<[1], [0], [0], [1], [0, 0, 1, 1], [], []>} : vector<16x32xf32>, vector<32x128xf32>, vector<16x128xf32> -> vector<16x128xf32>
    %40 = vector.shape_cast %39 : vector<16x128xf32> to vector<1x16x128xf32>
    %41 = vector.shape_cast %40 : vector<1x16x128xf32> to vector<16x128xf32>
    %cst_25 = arith.constant dense<0.000000e+00> : vector<6x128xf32>
    %42 = tpu.matmul %5, %41, %cst_25 {dimension_numbers = #tpu.dot_dimension_numbers<[1], [0], [0], [1], [0, 0, 1, 1], [], []>} : vector<6x16xf32>, vector<16x128xf32>, vector<6x128xf32> -> vector<6x128xf32>
    %43 = vector.shape_cast %42 : vector<6x128xf32> to vector<1x6x128xf32>
    %44 = arith.mulf %12, %12 : vector<1x6x128xf32>
    %45 = arith.mulf %19, %19 : vector<1x6x128xf32>
    %46 = arith.mulf %12, %19 : vector<1x6x128xf32>
    %47 = arith.subf %27, %44 : vector<1x6x128xf32>
    %48 = arith.subf %35, %45 : vector<1x6x128xf32>
    %49 = arith.subf %43, %46 : vector<1x6x128xf32>
    %cst_26 = arith.constant 2.000000e+00 : f32
    %50 = vector.broadcast %cst_26 : f32 to vector<1x6x128xf32>
    %51 = arith.mulf %50, %46 : vector<1x6x128xf32>
    %52 = vector.broadcast %2 : f32 to vector<1x6x128xf32>
    %53 = arith.addf %51, %52 : vector<1x6x128xf32>
    %cst_27 = arith.constant 2.000000e+00 : f32
    %54 = vector.broadcast %cst_27 : f32 to vector<1x6x128xf32>
    %55 = arith.mulf %54, %49 : vector<1x6x128xf32>
    %56 = vector.broadcast %3 : f32 to vector<1x6x128xf32>
    %57 = arith.addf %55, %56 : vector<1x6x128xf32>
    %58 = arith.mulf %53, %57 : vector<1x6x128xf32>
    %59 = arith.addf %44, %45 : vector<1x6x128xf32>
    %60 = vector.broadcast %2 : f32 to vector<1x6x128xf32>
    %61 = arith.addf %59, %60 : vector<1x6x128xf32>
    %62 = arith.addf %47, %48 : vector<1x6x128xf32>
    %63 = vector.broadcast %3 : f32 to vector<1x6x128xf32>
    %64 = arith.addf %62, %63 : vector<1x6x128xf32>
    %65 = arith.mulf %61, %64 : vector<1x6x128xf32>
    %66 = arith.divf %58, %65 : vector<1x6x128xf32>
    %cst_28 = arith.constant 1.000000e+00 : f32
    %67 = vector.broadcast %cst_28 : f32 to vector<1x6x128xf32>
    %68 = arith.subf %67, %66 : vector<1x6x128xf32>
    %cst_29 = arith.constant dense<0.000000e+00> : vector<6x128xf32>
    %69 = vector.multi_reduction <add>, %68, %cst_29 [0] : vector<1x6x128xf32> to vector<6x128xf32>
    %cst_30 = arith.constant dense<0.000000e+00> : vector<128xf32>
    %70 = vector.multi_reduction <add>, %69, %cst_30 [0] : vector<6x128xf32> to vector<128xf32>
    %71 = vector.shape_cast %70 : vector<128xf32> to vector<1x1x128xf32>
    %c0_31 = arith.constant 0 : index
    %c0_32 = arith.constant 0 : index
    %c0_33 = arith.constant 0 : index
    %72 = vector.load %arg6[%c0_31, %c0_32, %c0_33] : memref<1x1x128xf32, #tpu.memory_space<vmem>>, vector<1x1x128xf32>
    tpu.vector_store %arg6[%c0_31, %c0_32, %c0_33], %71 {strides = array<i32>} : memref<1x1x128xf32, #tpu.memory_space<vmem>>, vector<1x1x128xf32>,
    return
  }
  func.func @transform_0(%arg0: i32) -> i32 {
    %c0_i32 = arith.constant 0 : i32
    %c0_i32_0 = arith.constant 0 : i32
    return %c0_i32 : i32
  }
  func.func @transform_1(%arg0: i32) -> (i32, i32) {
    %c0_i32 = arith.constant 0 : i32
    %c0_i32_0 = arith.constant 0 : i32
    %c0_i32_1 = arith.constant 0 : i32
    return %c0_i32, %c0_i32_0 : i32, i32
  }
  func.func @transform_2(%arg0: i32) -> (i32, i32) {
    %c0_i32 = arith.constant 0 : i32
    %c0_i32_0 = arith.constant 0 : i32
    %c0_i32_1 = arith.constant 0 : i32
    return %c0_i32, %c0_i32_0 : i32, i32
  }
  func.func @transform_3(%arg0: i32) -> (i32, i32, i32, i32) {
    %c0_i32 = arith.constant 0 : i32
    %c0_i32_0 = arith.constant 0 : i32
    %c0_i32_1 = arith.constant 0 : i32
    %c0_i32_2 = arith.constant 0 : i32
    return %arg0, %c0_i32, %c0_i32_0, %c0_i32_1 : i32, i32, i32, i32
  }
  func.func @transform_4(%arg0: i32) -> (i32, i32, i32, i32) {
    %c0_i32 = arith.constant 0 : i32
    %c0_i32_0 = arith.constant 0 : i32
    %c0_i32_1 = arith.constant 0 : i32
    %c0_i32_2 = arith.constant 0 : i32
    return %arg0, %c0_i32, %c0_i32_0, %c0_i32_1 : i32, i32, i32, i32
  }
  func.func @transform_5(%arg0: i32) -> (i32, i32, i32) {
    %c0_i32 = arith.constant 0 : i32
    %c0_i32_0 = arith.constant 0 : i32
    %c0_i32_1 = arith.constant 0 : i32
    return %arg0, %c0_i32, %c0_i32_0 : i32, i32, i32
  }
}

</mosaic_0001>

<bundles_post_ra>
// kernel: tpu_custom_call.1
= control target key start
LH: loop header
LB: loop body
LE: loop exit
PB: predicated region body
PF: predicated region fallthrough
CT: control target
= control target key end

     0   :  { %10 = vsyncpa [#allocation5], 0  ;;  %s1630_s0 = inlined_call_operand.hbm [shape: f32[2], index: 0, kind: input, shape index: {}]   ;;  %s1631_s1 = inlined_call_operand.hbm [shape: f32[32,128], index: 1, kind: input, shape index: {}]   ;;  %s1632_s2 = inlined_call_operand.hbm [shape: f32[6,16], index: 2, kind: input, shape index: {}]   ;;  %s1633_s3 = inlined_call_operand.hbm [shape: f32[1,3,16,32], index: 3, kind: input, shape index: {}]   ;;  %s1634_s4 = inlined_call_operand.hbm [shape: f32[1,3,16,32], index: 4, kind: input, shape index: {}]   ;;  %s1635_s5 = inlined_call_operand.hbm [shape: f32[1,1,128], index: 5, kind: output, shape index: {}]  }
   0x1   :  { %11 = vsyncpa [#allocation3], 0 }
   0x2   :  { %12 = vsyncpa [#allocation8], 0 }
   0x3   :  { %13 = vsyncpa [#allocation11], 0 }
   0x4   :  { %14 = vsyncpa [#allocation4], 0  ;;  %s1330_s18 = smov [#allocation7]   ;;  %s1331_s20 = smov [#allocation6]  }
   0x5   :  { %s41_s19 = sshll.u32 %s1330_s18, 4  ;;  %s28_s21 = sshll.u32 %s1331_s20, 4  ;;  %s42_s19 = int_to_ptr.vmem [resolvable:$true] %s41_s19  ;;  %s29_s21 = int_to_ptr.vmem [resolvable:$true] %s28_s21 }
   0x6   :  { %s1200_s24 = scalar_lea.hbm %s1632_s2, 128 }
   0x7   :  { %p1201_p0 = scmp.ne.s32.totalorder %s1632_s2, %s1200_s24  ;;  %p1204_p1 = scmp.lt.u32.totalorder %s1200_s24, %s1632_s2 }
   0x9   :  { %p1206_p2 = pnand %p1204_p1, %p1201_p0 }
   0xb   :  { %1209 = shalt.err (!%p1206_p2)
}
   0xc   :  { %s1210_s29 = scalar_lea.vmem %s42_s19, 128  ;;  %p1215_p4 = scmp.lt.s32.totalorder %s42_s19, %s42_s19 }
   0xd   :  { %p1211_p3 = scmp.ne.s32.totalorder %s42_s19, %s1210_s29  ;;  %p1216_p5 = scmp.lt.s32.totalorder %s1210_s29, %s1210_s29 }
   0xf   :  { %p1217_p6 = por %p1216_p5, %p1215_p4 }
  0x11   :  { %p1218_p7 = pnand %p1217_p6, %p1211_p3 }
  0x13   :  { %1221 = shalt.err (!%p1218_p7)
}
  0x14   :  { %44 = dma.hbm_to_vmem [thread:$0]  %s1632_s2, 128, %s42_s19, [#allocation8]  }
  0x15   :  { %s1222_s9 = scalar_lea.hbm %s1630_s0, 16 }
  0x16   :  { %p1223_p8 = scmp.ne.s32.totalorder %s1630_s0, %s1222_s9  ;;  %p1226_p9 = scmp.lt.u32.totalorder %s1222_s9, %s1630_s0 }
  0x18   :  { %p1228_p10 = pnand %p1226_p9, %p1223_p8 }
  0x1a   :  { %1231 = shalt.err (!%p1228_p10)
}
  0x1b   :  { %s1332_s14 = smov [#allocation2]   ;;  %s1232_s18 = scalar_lea.hbm %s1631_s1, 512 }
  0x1c   :  { %22 = dma.hbm_to_smem %s1630_s0, 16, %s1332_s14, [#allocation5]  }
  0x1d   :  { %p1233_p11 = scmp.ne.s32.totalorder %s1631_s1, %s1232_s18  ;;  %p1236_p12 = scmp.lt.u32.totalorder %s1232_s18, %s1631_s1 }
  0x1f   :  { %p1238_p13 = pnand %p1236_p12, %p1233_p11 }
  0x21   :  { %1241 = shalt.err (!%p1238_p13)
}
  0x22   :  { %s1242_s24 = scalar_lea.vmem %s29_s21, 512  ;;  %p1247_p1 = scmp.lt.s32.totalorder %s29_s21, %s29_s21 }
  0x23   :  { %p1243_p0 = scmp.ne.s32.totalorder %s29_s21, %s1242_s24  ;;  %p1248_p2 = scmp.lt.s32.totalorder %s1242_s24, %s1242_s24 }
  0x25   :  { %p1249_p3 = por %p1248_p2, %p1247_p1 }
  0x27   :  { %p1250_p4 = pnand %p1249_p3, %p1243_p0 }
  0x29   :  { %1253 = shalt.err (!%p1250_p4)
}
  0x2a   :  { %s1333_s0 = smov 128   ;;  %s1334_s25 = smov 8  }
  0x2b   :  { %34 = dma.hbm_to_vmem [thread:$0]  %s1631_s1, 512, %s29_s21, [#allocation3], %s1333_s0, %s1333_s0, %s1334_s25  }
  0x2c   :  { %s1335_s28 = smov [#allocation9]   ;;  %s1336_s30 = smov [#allocation10]  }
  0x2d   :  { %s50_s29 = sshll.u32 %s1335_s28, 4  ;;  %s62_s6 = sshll.u32 %s1336_s30, 4  ;;  %s51_s29 = int_to_ptr.vmem [resolvable:$true] %s50_s29  ;;  %s63_s6 = int_to_ptr.vmem [resolvable:$true] %s62_s6 }
  0x2e   :  { %s1254_s9 = scalar_lea.hbm %s1633_s3, 768 }
  0x2f   :  { %p1255_p5 = scmp.ne.s32.totalorder %s1633_s3, %s1254_s9  ;;  %p1258_p6 = scmp.lt.u32.totalorder %s1254_s9, %s1633_s3 }
  0x31   :  { %p1260_p7 = pnand %p1258_p6, %p1255_p5 }
  0x33   :  { %1263 = shalt.err (!%p1260_p7)
}
  0x34   :  { %s1264_s1 = scalar_lea.vmem %s51_s29, 768  ;;  %p1269_p9 = scmp.lt.s32.totalorder %s51_s29, %s51_s29 }
  0x35   :  { %p1265_p8 = scmp.ne.s32.totalorder %s51_s29, %s1264_s1  ;;  %p1270_p10 = scmp.lt.s32.totalorder %s1264_s1, %s1264_s1 }
  0x37   :  { %p1271_p11 = por %p1270_p10, %p1269_p9 }
  0x39   :  { %p1272_p12 = pnand %p1271_p11, %p1265_p8 }
  0x3b   :  { %1275 = shalt.err (!%p1272_p12)
}
  0x3c   :  { %56 = dma.hbm_to_vmem [thread:$0]  %s1633_s3, 768, %s51_s29, [#allocation8], %s1333_s0, %s1333_s0, %s1334_s25  }
  0x3d   :  { %s1276_s2 = scalar_lea.hbm %s1634_s4, 768 }
  0x3e   :  { %p1277_p13 = scmp.ne.s32.totalorder %s1634_s4, %s1276_s2  ;;  %p1280_p0 = scmp.lt.u32.totalorder %s1276_s2, %s1634_s4 }
  0x40   :  { %p1282_p1 = pnand %p1280_p0, %p1277_p13 }
  0x42   :  { %1285 = shalt.err (!%p1282_p1)
}
  0x43   :  { %s1286_s22 = scalar_lea.vmem %s63_s6, 768  ;;  %p1291_p3 = scmp.lt.s32.totalorder %s63_s6, %s63_s6 }
  0x44   :  { %p1287_p2 = scmp.ne.s32.totalorder %s63_s6, %s1286_s22  ;;  %p1292_p4 = scmp.lt.s32.totalorder %s1286_s22, %s1286_s22 }
  0x46   :  { %p1293_p5 = por %p1292_p4, %p1291_p3 }
  0x48   :  { %p1294_p6 = pnand %p1293_p5, %p1287_p2 }
  0x4a   :  { %1297 = shalt.err (!%p1294_p6)
}
  0x4b   :  { %68 = dma.hbm_to_vmem [thread:$0]  %s1634_s4, 768, %s63_s6, [#allocation11], %s1333_s0, %s1333_s0, %s1334_s25  }
  0x4c   :  { %1320 = dma.done.wait [#allocation5], 16  }
  0x4d   :  { %1321 = vsyncadd [#allocation5], 4294967280 }
  0x4e   :  { %1322 = dma.done.wait [#allocation3], 512  }
  0x4f   :  { %1323 = vsyncadd [#allocation3], 4294966784 }
  0x50   :  { %1324 = dma.done.wait [#allocation8], 896  }
  0x51   :  { %1325 = vsyncadd [#allocation8], 4294966400 }
  0x52   :  { %1326 = dma.done.wait [#allocation11], 768  }
  0x53   :  { %1327 = vsyncadd [#allocation11], 4294966528 }
  0x54   :  { %84 = sfence }
  0x55   :  { %v99_v0 = vld [vmem:[#allocation6] sm:$0xff]  ;;  %v100_v1 = vld [vmem:[#allocation6 + $0x8] sm:$0xff]  ;;  %v101_v2 = vld [vmem:[#allocation6 + $0x10] sm:$0xff]  ;;  %vm104_vm0 = vcmask 261120   ;;  %v1337_v22 = vmov 0.0|0.0   ;;  %vm1338_vm1 = vmmov 0  }
  0x56   :  { %v1440_v3 = vpack.c.bf16 %v100_v1, %v99_v0  ;;  %v102_v4 = vld [vmem:[#allocation6 + $0x18] sm:$0xff]  ;;  %v1442_v5 = vld [vmem:[#allocation9] sm:$0xff]  ;;  %v1457_v13 = vld [vmem:[#allocation9 + $0x8] sm:$0xff]  ;;  %1140 = vmatprep.subr.bf16.mxu1 %v1337_v22  ;;  %v1339_v23 = vmov 0.0   ;;  %vm196_vm2 = vcmask 130048   ;;  %s97_s4 = sld [smem:[#allocation2]] }
  0x57   :  { %v1444_v6 = vld [vmem:[#allocation9 + $0x10] sm:$0xff]  ;;  %v1446_v7 = vpack.c.bf16 %v102_v4, %v101_v2  ;;  %v1448_v8 = vld [vmem:[#allocation9 + $0x20] sm:$0xff]  ;;  %v105_v9 = vsel %vm104_vm0, %v1442_v5, 0.0  ;;  %v1459_v14 = vld [vmem:[#allocation9 + $0x18] sm:$0xff]  ;;  %v110_v16 = vsel %vm104_vm0, %v1457_v13, 0.0  ;;  %1057 = vmatprep.mubr.msk.f32.mxu1 %vm1338_vm1, %v1339_v23  ;;  %v431_v44 = vmul.f32 %v1442_v5, %v1442_v5  ;;  %s981_s24 = sld [smem:[#allocation2 + $0x1]] }
  0x58   :  { %v106_v10 = vsel %vm104_vm0, %v1444_v6, 0.0  ;;  %1133 = vmatprep.subr.bf16.mxu0 %v1440_v3  ;;  %v108_v12 = vsel %vm104_vm0, %v1448_v8, 0.0  ;;  %v1462_v15 = vld [vmem:[#allocation9 + $0x28] sm:$0xff]  ;;  %v111_v18 = vsel %vm104_vm0, %v1459_v14, 0.0  ;;  %v1480_v24 = vld [vmem:[#allocation10] sm:$0xff]  ;;  %v1482_v25 = vld [vmem:[#allocation10 + $0x10] sm:$0xff]  ;;  %v433_v45 = vmul.f32 %v1444_v6, %v1444_v6 }
  0x59   :  { %v107_v11 = vadd.f32 %v106_v10, %v105_v9  ;;  %1135 = vmatpush3.bf16.msra.mxu0 %v1440_v3  ;;  %v113_v19 = vsel %vm104_vm0, %v1462_v15, 0.0  ;;  %v112_v20 = vadd.f32 %v111_v18, %v110_v16  ;;  %v270_v26 = vsel %vm104_vm0, %v1480_v24, 0.0  ;;  %v1488_v28 = vld [vmem:[#allocation10 + $0x20] sm:$0xff]  ;;  %v1490_v31 = vld [vmem:[#allocation10 + $0x8] sm:$0xff]  ;;  %v1492_v32 = vld [vmem:[#allocation10 + $0x18] sm:$0xff]  ;;  %s1340_s0 = smov [#allocation12]  }
  0x5a   :  { %1137 = vmatprep.subr.bf16.mxu0 %v1446_v7  ;;  %v271_v27 = vsel %vm104_vm0, %v1482_v25, 0.0  ;;  %v273_v34 = vsel %vm104_vm0, %v1488_v28, 0.0  ;;  %v1496_v36 = vld [vmem:[#allocation7] sm:$0x3f]  ;;  %v275_v38 = vsel %vm104_vm0, %v1490_v31, 0.0  ;;  %v276_v39 = vsel %vm104_vm0, %v1492_v32, 0.0 }
  0x5b   :  { %v109_v17 = vadd.f32 %v108_v12, %v107_v11  ;;  %v114_v21 = vadd.f32 %v113_v19, %v112_v20  ;;  %v272_v30 = vadd.f32 %v271_v27, %v270_v26  ;;  %v1502_v40 = vld [vmem:[#allocation10 + $0x28] sm:$0xff]  ;;  %v277_v41 = vadd.f32 %v276_v39, %v275_v38  ;;  %s969_s25 = sshll.u32 %s1340_s0, 4  ;;  %s970_s25 = int_to_ptr.vmem [resolvable:$true] %s969_s25 }
  0x5c   :  { %v278_v42 = vsel %vm104_vm0, %v1502_v40, 0.0  ;;  %v432_v46 = vmul.f32 %v1457_v13, %v1457_v13  ;;  %v434_v47 = vmul.f32 %v1459_v14, %v1459_v14  ;;  %v435_v48 = vmul.f32 %v1448_v8, %v1448_v8  ;;  %s1298_s26 = scalar_lea.vmem %s970_s25, 16  ;;  %s1302_s27 = scalar_lea.vmem %s970_s25, 32 }
  0x5d   :  { %1050 = vmatprep.mubr.msk.f32.mxu0 %vm104_vm0, %v109_v17  ;;  %1139 = vmatpush3.bf16.msra.mxu0 %v1446_v7  ;;  %v274_v37 = vadd.f32 %v273_v34, %v272_v30  ;;  %v279_v43 = vadd.f32 %v278_v42, %v277_v41  ;;  %v436_v49 = vmul.f32 %v1462_v15, %v1462_v15  ;;  %v437_v50 = vsel %vm104_vm0, %v431_v44, 0.0  ;;  %p1299_p7 = scmp.ne.s32.totalorder %s970_s25, %s1298_s26  ;;  %p1303_p8 = scmp.lt.s32.totalorder %s970_s25, %s970_s25 }
  0x5e   :  { %1151 = vmatprep.subr.bf16.mxu0 %v1337_v22  ;;  %v438_v51 = vsel %vm104_vm0, %v433_v45, 0.0  ;;  %v442_v53 = vsel %vm104_vm0, %v432_v46, 0.0  ;;  %v443_v54 = vsel %vm104_vm0, %v434_v47, 0.0  ;;  %v440_v55 = vsel %vm104_vm0, %v435_v48, 0.0  ;;  %p1304_p9 = scmp.lt.s32.totalorder %s1302_s27, %s1298_s26 }
  0x5f   :  { %v439_v52 = vadd.f32 %v438_v51, %v437_v50  ;;  %v444_v56 = vadd.f32 %v443_v54, %v442_v53  ;;  %v445_v58 = vsel %vm104_vm0, %v436_v49, 0.0  ;;  %v598_v11 = vmul.f32 %v1480_v24, %v1480_v24 }
  0x60   :  { %1051 = vmatmul.mubr.msk.f32.vlgmr.msra.gmra.mrb[0].mxu0 %vm104_vm0, %v114_v21  ;;  %v600_v12 = vmul.f32 %v1482_v25, %v1482_v25  ;;  %v602_v17 = vmul.f32 %v1488_v28, %v1488_v28  ;;  %v599_v26 = vmul.f32 %v1490_v31, %v1490_v31  ;;  %v601_v27 = vmul.f32 %v1492_v32, %v1492_v32  ;;  %p1305_p10 = por %p1304_p9, %p1303_p8 }
  0x61   :  { %1075 = vmatprep.mubr.msk.f32.mxu0 %vm1338_vm1, %v1339_v23  ;;  %v441_v57 = vadd.f32 %v440_v55, %v439_v52  ;;  %v446_v59 = vadd.f32 %v445_v58, %v444_v56  ;;  %v604_v18 = vsel %vm104_vm0, %v598_v11, 0.0  ;;  %v767_v44 = vmul.f32 %v1482_v25, %v1444_v6 }
  0x62   :  { %v605_v19 = vsel %vm104_vm0, %v600_v12, 0.0  ;;  %v607_v30 = vsel %vm104_vm0, %v602_v17, 0.0  ;;  %v610_v38 = vsel %vm104_vm0, %v601_v27, 0.0  ;;  %v766_v45 = vmul.f32 %v1490_v31, %v1457_v13  ;;  %p1306_p11 = pnand %p1305_p10, %p1299_p7 }
  0x63   :  { %v606_v21 = vadd.f32 %v605_v19, %v604_v18  ;;  %v768_v46 = vmul.f32 %v1492_v32, %v1459_v14  ;;  %v770_v47 = vmul.f32 %v1502_v40, %v1462_v15  ;;  %v772_v48 = vsel %vm104_vm0, %v767_v44, 0.0 }
  0x64   :  { %v939_v54 = vstv %s97_s4  ;;  %v942_v55 = vstv %s981_s24  ;;  %vm954_vm3 = vcmask 1045504  }
  0x65   :  { %v608_v34 = vadd.f32 %v607_v30, %v606_v21  ;;  %v777_v6 = vsel %vm104_vm0, %v768_v46, 0.0  ;;  %v779_v14 = vsel %vm104_vm0, %v770_v47, 0.0 }
 0x133   :  { %v1052_v29 = vpop.f32.mrb[0].mxu0 }
 0x134   :  { %v187_v33 = vpop.f32.mrb[1].mxu0 }
 0x135   :  { %v1141_v35 = vpack.c.bf16 %v1052_v29, %v187_v33 }
 0x137   :  { %1142 = vmatpush3.bf16.msra.mxu1 %v1141_v35  ;;  %v603_v35 = vmul.f32 %v1502_v40, %v1502_v40 }
 0x138   :  { %1144 = vmatprep.subr.bf16.mxu1 %v1440_v3 }
 0x139   :  { %v612_v41 = vsel %vm104_vm0, %v603_v35, 0.0 }
 0x13a   :  { %1058 = vmatmul.mubr.msk.f32.vlgmr.msra.gmra.mrb[0].mxu1 %vm196_vm2, %v1496_v36 }
 0x13b   :  { %1146 = vmatpush3.bf16.msra.mxu1 %v1440_v3  ;;  %1068 = vmatprep.mubr.msk.f32.mxu1 %vm104_vm0, %v274_v37  ;;  %v609_v37 = vsel %vm104_vm0, %v599_v26, 0.0 }
 0x13c   :  { %1148 = vmatprep.subr.bf16.mxu1 %v1446_v7  ;;  %v611_v39 = vadd.f32 %v610_v38, %v609_v37 }
 0x13e   :  { %v613_v42 = vadd.f32 %v612_v41, %v611_v39 }
 0x13f   :  { %1150 = vmatpush3.bf16.msra.mxu1 %v1446_v7 }
 0x140   :  { %1162 = vmatprep.subr.bf16.mxu1 %v1337_v22 }
 0x142   :  { %1069 = vmatmul.mubr.msk.f32.vlgmr.msra.gmra.mrb[2].mxu1 %vm104_vm0, %v279_v43  ;;  %v765_v43 = vmul.f32 %v1480_v24, %v1442_v5  ;;  %v776_v24 = vsel %vm104_vm0, %v766_v45, 0.0 }
 0x143   :  { %1093 = vmatprep.mubr.msk.f32.mxu1 %vm1338_vm1, %v1339_v23  ;;  %v778_v25 = vadd.f32 %v777_v6, %v776_v24 }
 0x145   :  { %v780_v32 = vadd.f32 %v779_v14, %v778_v25 }
 0x20d   :  { %v266_v60 = vpop.f32.mrb[0].mxu1 }
 0x20e   :  { %v1059_v61 = vpop.f32.mrb[1].mxu1  ;;  %v1546_v1 = vmul.f32 %v266_v60, %v266_v60 }
 0x215   :  { %v1070_v62 = vpop.f32.mrb[2].mxu1 }
 0x216   :  { %v352_v63 = vpop.f32.mrb[3].mxu1 }
 0x217   :  { %v1152_v0 = vpack.c.bf16 %v1070_v62, %v352_v63 }
 0x219   :  { %1153 = vmatpush3.bf16.msra.mxu0 %v1152_v0 }
 0x21a   :  { %1155 = vmatprep.subr.bf16.mxu0 %v1440_v3 }
 0x21c   :  { %1076 = vmatmul.mubr.msk.f32.vlgmr.msra.gmra.mrb[2].mxu0 %vm196_vm2, %v1496_v36 }
 0x21d   :  { %1157 = vmatpush3.bf16.msra.mxu0 %v1440_v3  ;;  %1086 = vmatprep.mubr.msk.f32.mxu0 %vm104_vm0, %v441_v57 }
 0x21e   :  { %1159 = vmatprep.subr.bf16.mxu0 %v1446_v7 }
 0x221   :  { %1161 = vmatpush3.bf16.msra.mxu0 %v1446_v7 }
 0x222   :  { %1173 = vmatprep.subr.bf16.mxu0 %v1337_v22 }
 0x224   :  { %1087 = vmatmul.mubr.msk.f32.vlgmr.msra.gmra.mrb[4].mxu0 %vm104_vm0, %v446_v59 }
 0x225   :  { %1111 = vmatprep.mubr.msk.f32.mxu0 %vm1338_vm1, %v1339_v23 }
 0x2ef   :  { %v427_v2 = vpop.f32.mrb[2].mxu0 }
 0x2f0   :  { %v1548_v4 = vmul.f32 %v427_v2, %v427_v2  ;;  %v1550_v9 = vmul.f32 %v427_v2, %v266_v60  ;;  %v1077_v10 = vpop.f32.mrb[3].mxu0 }
 0x2f2   :  { %v1558_v16 = vadd.f32 %v1548_v4, %v1546_v1  ;;  %v938_v62 = vmul.f32 2.0, %v1550_v9 }
 0x2f4   :  { %v946_v57 = vadd.f32 %v1558_v16, %v939_v54  ;;  %v940_v2 = vadd.f32 %v939_v54, %v938_v62 }
 0x2f7   :  { %v1088_v20 = vpop.f32.mrb[4].mxu0 }
 0x2f8   :  { %v519_v29 = vpop.f32.mrb[5].mxu0 }
 0x2f9   :  { %v1163_v33 = vpack.c.bf16 %v1088_v20, %v519_v29 }
 0x2fb   :  { %1164 = vmatpush3.bf16.msra.mxu1 %v1163_v33 }
 0x2fc   :  { %1166 = vmatprep.subr.bf16.mxu1 %v1440_v3 }
 0x2fe   :  { %1094 = vmatmul.mubr.msk.f32.vlgmr.msra.gmra.mrb[4].mxu1 %vm196_vm2, %v1496_v36 }
 0x2ff   :  { %1168 = vmatpush3.bf16.msra.mxu1 %v1440_v3  ;;  %1104 = vmatprep.mubr.msk.f32.mxu1 %vm104_vm0, %v608_v34 }
 0x300   :  { %1170 = vmatprep.subr.bf16.mxu1 %v1446_v7 }
 0x303   :  { %1172 = vmatpush3.bf16.msra.mxu1 %v1446_v7 }
 0x304   :  { %1184 = vmatprep.subr.bf16.mxu1 %v1337_v22  ;;  %v769_v22 = vmul.f32 %v1488_v28, %v1448_v8 }
 0x306   :  { %1105 = vmatmul.mubr.msk.f32.vlgmr.msra.gmra.mrb[6].mxu1 %vm104_vm0, %v613_v42  ;;  %v774_v13 = vsel %vm104_vm0, %v769_v22, 0.0 }
 0x307   :  { %1129 = vmatprep.mubr.msk.f32.mxu1 %vm1338_vm1, %v1339_v23  ;;  %v771_v23 = vsel %vm104_vm0, %v765_v43, 0.0 }
 0x308   :  { %v773_v5 = vadd.f32 %v772_v48, %v771_v23 }
 0x30a   :  { %v775_v31 = vadd.f32 %v774_v13, %v773_v5 }
 0x3d1   :  { %v594_v8 = vpop.f32.mrb[4].mxu1 }
 0x3d2   :  { %v935_v28 = vsub.f32 %v594_v8, %v1546_v1  ;;  %v1095_v15 = vpop.f32.mrb[5].mxu1 }
 0x3d9   :  { %v1106_v40 = vpop.f32.mrb[6].mxu1 }
 0x3da   :  { %v686_v49 = vpop.f32.mrb[7].mxu1 }
 0x3db   :  { %v1174_v50 = vpack.c.bf16 %v1106_v40, %v686_v49 }
 0x3dd   :  { %1175 = vmatpush3.bf16.msra.mxu0 %v1174_v50 }
 0x3de   :  { %1177 = vmatprep.subr.bf16.mxu0 %v1440_v3 }
 0x3e0   :  { %1112 = vmatmul.mubr.msk.f32.vlgmr.msra.gmra.mrb[6].mxu0 %vm196_vm2, %v1496_v36 }
 0x3e1   :  { %1179 = vmatpush3.bf16.msra.mxu0 %v1440_v3  ;;  %1122 = vmatprep.mubr.msk.f32.mxu0 %vm104_vm0, %v775_v31 }
 0x3e2   :  { %1181 = vmatprep.subr.bf16.mxu0 %v1446_v7 }
 0x3e5   :  { %1183 = vmatpush3.bf16.msra.mxu0 %v1446_v7 }
 0x3e8   :  { %1123 = vmatmul.mubr.msk.f32.vlgmr.msra.gmra.mrb[8].mxu0 %vm104_vm0, %v780_v32 }
 0x4b3   :  { %v761_v51 = vpop.f32.mrb[6].mxu0 }
 0x4b4   :  { %v936_v52 = vsub.f32 %v761_v51, %v1548_v4  ;;  %v1113_v53 = vpop.f32.mrb[7].mxu0 }
 0x4b6   :  { %v947_v56 = vadd.f32 %v936_v52, %v935_v28 }
 0x4b8   :  { %v948_v3 = vadd.f32 %v947_v56, %v942_v55 }
 0x4ba   :  { %v949_v58 = vmul.f32 %v948_v3, %v946_v57 }
 0x4bb   :  { %v1124_v59 = vpop.f32.mrb[8].mxu0 }
 0x4bc   :  { %v853_v60 = vpop.f32.mrb[9].mxu0  ;;  %1198 = vrcp.f32 %v949_v58 }
 0x4bd   :  { %v1185_v61 = vpack.c.bf16 %v1124_v59, %v853_v60 }
 0x4bf   :  { %1186 = vmatpush3.bf16.msra.mxu1 %v1185_v61 }
 0x4c2   :  { %1130 = vmatmul.mubr.msk.f32.vlgmr.msra.gmra.mrb[8].mxu1 %vm196_vm2, %v1496_v36 }
 0x4c6   :  { %v1199_v11 = vpop.eup %1198 }
 0x595   :  { %v928_v7 = vpop.f32.mrb[8].mxu1 }
 0x596   :  { %v937_v63 = vsub.f32 %v928_v7, %v1550_v9  ;;  %v1131_v0 = vpop.f32.mrb[9].mxu1 }
 0x598   :  { %v941_v1 = vmul.f32 2.0, %v937_v63 }
 0x59a   :  { %v943_v4 = vadd.f32 %v942_v55, %v941_v1 }
 0x59c   :  { %v944_v10 = vmul.f32 %v943_v4, %v940_v2 }
 0x59e   :  { %v951_v12 = vmul.f32 %v1199_v11, %v944_v10 }
 0x5a0   :  { %v952_v16 = vsub.f32 1.0, %v951_v12 }
 0x5a2   :  { %v955_v17 = vsel %vm954_vm3, %v952_v16, 0.0 }
 0x5a3   :  { %v956_v18 = vrot.slane %v955_v17, 4 }
 0x5a5   :  { %v957_v19 = vadd.f32 %v956_v18, %v955_v17 }
 0x5a7   :  { %v958_v20 = vrot.slane %v957_v19, 2 }
 0x5a9   :  { %v959_v36 = vadd.f32 %v958_v20, %v957_v19 }
 0x5ab   :  { %v960_v21 = vrot.slane %v959_v36, 1 }
 0x5ad   :  { %v961_v26 = vadd.f32 %v960_v21, %v959_v36 }
 0x5af   :  { %962 = vst [vmem:[#allocation12] sm:$0x1] %v961_v26 }
 0x5b0   :  { %1309 = shalt.err (!%p1306_p11)
}
 0x5b1   :  { %s1310_s30 = scalar_lea.hbm %s1635_s5, 16 }
 0x5b2   :  { %p1311_p12 = scmp.ne.s32.totalorder %s1635_s5, %s1310_s30  ;;  %p1314_p13 = scmp.lt.u32.totalorder %s1310_s30, %s1635_s5 }
 0x5b4   :  { %p1316_p0 = pnand %p1314_p13, %p1311_p12 }
 0x5b6   :  { %1319 = shalt.err (!%p1316_p0)
}
 0x5b7   :  { %972 = dma.vmem_to_hbm [thread:$0]  %s970_s25, 16, %s1635_s5, [#allocation4]  }
 0x5b8   :  { %1328 = dma.done.wait [#allocation4], 16  }
 0x5b9   :  { %1329 = vsyncadd [#allocation4], 4294967280 }
 0x5ba   :  { %976 = vsyncpa [#allocation3], 1 }
 0x5bb   :  { %977 = vsyncpa [#allocation8], 1 }
 0x5bc   :  { %978 = vsyncpa [#allocation11], 1 }
 0x5bd   :  { %979 = vsyncpa [#allocation4], 1 }
 0x5be   :  { %980 = vsyncpa [#allocation5], 1 }

</bundles_post_ra>
